<compile_context>
chip_gen: v5e
topology: v5e:2x2
jax: 0.10.0
libtpu: 0.0.40
codegen_flags: <defaults>
</compile_context>

<pallas_src>
import functools

import jax
import jax.numpy as jnp
from jax.experimental import pallas as pl
from jax.experimental.pallas import tpu as pltpu

EPSILON = 1e-8


def _adain_rows_kernel(x_ref, ya_ref, yb_ref, o_ref, *, epsilon, inv_count):
    # x_ref: (TILE_R, HW_pad)  -- each row is one (batch, channel) slab
    x = x_ref[...].astype(jnp.float32)

    # Instance-norm statistics over the spatial axis (padding lanes are zero,
    # so summing and dividing by the *real* element count is exact).
    s = jnp.sum(x, axis=-1, keepdims=True)              # (TILE_R, 1)
    ss = jnp.sum(x * x, axis=-1, keepdims=True)         # (TILE_R, 1)
    mu = s * inv_count
    var = jnp.maximum(ss * inv_count - mu * mu, 0.0)
    inv_std = jax.lax.rsqrt(var + epsilon)

    # Fused normalize + style affine:  yA * (x - mu) * inv_std + yB
    ya = ya_ref[...].astype(jnp.float32)                # (TILE_R, 1)
    yb = yb_ref[...].astype(jnp.float32)                # (TILE_R, 1)
    scale = inv_std * ya
    shift = yb - mu * scale

    o_ref[...] = (x * scale + shift).astype(o_ref.dtype)


def _choose_tile_rows(n_rows, hw_pad, itemsize, max_tile_bytes=2 << 20):
    """Largest multiple-of-8 row tile that keeps a tile under max_tile_bytes."""
    rows_from_vmem = max_tile_bytes // max(1, hw_pad * itemsize)
    rows_from_vmem = max(8, (rows_from_vmem // 8) * 8)
    rows_needed = ((n_rows + 7) // 8) * 8
    return int(min(rows_from_vmem, rows_needed, 1024))


def adain_forward(x, y, weight, bias, *, epsilon=EPSILON):
    """AdaIN forward.

    x:      (B, C, H, W)       content features (NCHW, as in PyTorch)
    y:      (B, dimIn)         style vector
    weight: (2*dimOut, dimIn)  styleModulator.weight (PyTorch layout)
    bias:   (2*dimOut,)        styleModulator.bias
    """
    B, C, H, W = x.shape
    dim_in = y.shape[1]
    assert weight.shape == (2 * C, dim_in)
    assert bias.shape == (2 * C,)

    # ---- style Linear hoisted to plain XLA (tiny matmul, per review) ----
    style = (y.astype(jnp.float32) @ weight.T.astype(jnp.float32)
             + bias.astype(jnp.float32))                # (B, 2C)
    yA = style[:, :C].reshape(B * C, 1)                  # per-row scale
    yB = style[:, C:].reshape(B * C, 1)                  # per-row shift

    # ---- flatten x to rows, pad to (8, 128)-friendly shapes ----
    hw = H * W
    hw_pad = pl.cdiv(hw, 128) * 128                      # lane-dense last dim
    n_rows = B * C
    x_rows = x.reshape(n_rows, hw)

    itemsize = max(jnp.dtype(x.dtype).itemsize, 4)       # f32 intermediates
    tile_r = _choose_tile_rows(n_rows, hw_pad, itemsize)
    rows_pad = pl.cdiv(n_rows, tile_r) * tile_r

    if hw_pad != hw or rows_pad != n_rows:
        x_rows = jnp.pad(x_rows, ((0, rows_pad - n_rows), (0, hw_pad - hw)))
    if rows_pad != n_rows:
        yA = jnp.pad(yA, ((0, rows_pad - n_rows), (0, 0)))
        yB = jnp.pad(yB, ((0, rows_pad - n_rows), (0, 0)))

    kernel = functools.partial(
        _adain_rows_kernel, epsilon=float(epsilon), inv_count=1.0 / float(hw))

    out_rows = pl.pallas_call(
        kernel,
        out_shape=jax.ShapeDtypeStruct((rows_pad, hw_pad), x.dtype),
        grid=(rows_pad // tile_r,),
        in_specs=[
            pl.BlockSpec((tile_r, hw_pad), lambda r: (r, 0)),   # x row tile
            pl.BlockSpec((tile_r, 1), lambda r: (r, 0)),        # yA
            pl.BlockSpec((tile_r, 1), lambda r: (r, 0)),        # yB
        ],
        out_specs=pl.BlockSpec((tile_r, hw_pad), lambda r: (r, 0)),
        compiler_params=pltpu.CompilerParams(
            dimension_semantics=("parallel",)),
    )(x_rows, yA, yB)

    return out_rows[:n_rows, :hw].reshape(B, C, H, W)


def adain_reference(x, y, weight, bias, *, epsilon=EPSILON):
    """Pure-JAX reference mirroring the PyTorch forward."""
    B, C, H, W = x.shape
    tmp = x.reshape(B, C, -1).astype(jnp.float32)
    mu = tmp.mean(axis=2).reshape(B, C, 1, 1)
    var = jnp.maximum(
        (tmp * tmp).mean(axis=2).reshape(B, C, 1, 1) - mu * mu, 0.0)
    inv = jax.lax.rsqrt(var + epsilon)
    xn = (x.astype(jnp.float32) - mu) * inv
    style = y.astype(jnp.float32) @ weight.T.astype(jnp.float32) + bias
    yA = style[:, :C].reshape(B, C, 1, 1)
    yB = style[:, C:].reshape(B, C, 1, 1)
    return (yA * xn + yB).astype(x.dtype)


if __name__ == "__main__":
    key = jax.random.PRNGKey(0)
    k_x, k_y, k_w, k_x2 = jax.random.split(key, 4)

    B, C, H, W = 2, 4, 16, 16       # dimOut = C = 4, H*W = 256 (lane aligned)
    dim_in = 8

    x = jax.random.normal(k_x, (B, C, H, W), dtype=jnp.float32)
    y = jax.random.normal(k_y, (B, dim_in), dtype=jnp.float32)

    # styleModulator params: Linear(dimIn, 2*dimOut), weight scaled by 0.25,
    # bias filled with 0 (as in the module's __init__).
    bound = 1.0 / jnp.sqrt(jnp.float32(dim_in))
    weight = jax.random.uniform(k_w, (2 * C, dim_in),
                                minval=-bound, maxval=bound,
                                dtype=jnp.float32) * 0.25
    bias = jnp.zeros((2 * C,), dtype=jnp.float32)

    out = adain_forward(x, y, weight, bias)
    out = jax.block_until_ready(out)

    ref = adain_reference(x, y, weight, bias)
    assert out.shape == (B, C, H, W)
    assert jnp.allclose(out, ref, atol=1e-5, rtol=1e-5)

    # Second check: spatial size NOT a multiple of 128 (exercises padding +
    # divisor correction inside the wrapper/kernel).
    H2 = W2 = 10
    x2 = jax.random.normal(k_x2, (B, C, H2, W2), dtype=jnp.float32)
    out2 = jax.block_until_ready(adain_forward(x2, y, weight, bias))
    ref2 = adain_reference(x2, y, weight, bias)
    assert jnp.allclose(out2, ref2, atol=1e-5, rtol=1e-5)

    print("KERNEL_OK")
</pallas_src>

<mosaic_0001>
module attributes {stable_mosaic.version = 11 : i64} {
  func.func @_adain_rows_kernel(%arg0: i32, %arg1: memref<8x256xf32, #tpu.memory_space<vmem>>, %arg2: memref<8x1xf32, #tpu.memory_space<vmem>>, %arg3: memref<8x1xf32, #tpu.memory_space<vmem>>, %arg4: memref<8x256xf32, #tpu.memory_space<vmem>>) attributes {dimension_semantics = [#tpu.dimension_semantics<parallel>], iteration_bounds = array<i64: 1>, scalar_prefetch = 0 : i64, scratch_operands = 0 : i64, tpu.core_type = #tpu.core_type<tc>, window_params = [{transform_indices = @transform_0, window_bounds = array<i64: 8, 256>}, {transform_indices = @transform_1, window_bounds = array<i64: 8, 1>}, {transform_indices = @transform_2, window_bounds = array<i64: 8, 1>}, {transform_indices = @transform_3, window_bounds = array<i64: 8, 256>}]} {
    %c0 = arith.constant 0 : index
    %c0_0 = arith.constant 0 : index
    %0 = vector.load %arg1[%c0, %c0_0] : memref<8x256xf32, #tpu.memory_space<vmem>>, vector<8x256xf32>
    %cst = arith.constant dense<0.000000e+00> : vector<8xf32>
    %1 = vector.multi_reduction <add>, %0, %cst [1] : vector<8x256xf32> to vector<8xf32>
    %2 = vector.shape_cast %1 : vector<8xf32> to vector<8x1xf32>
    %3 = arith.mulf %0, %0 : vector<8x256xf32>
    %cst_1 = arith.constant dense<0.000000e+00> : vector<8xf32>
    %4 = vector.multi_reduction <add>, %3, %cst_1 [1] : vector<8x256xf32> to vector<8xf32>
    %5 = vector.shape_cast %4 : vector<8xf32> to vector<8x1xf32>
    %cst_2 = arith.constant 3.906250e-03 : f32
    %6 = vector.broadcast %cst_2 : f32 to vector<8x1xf32>
    %7 = arith.mulf %2, %6 : vector<8x1xf32>
    %cst_3 = arith.constant 3.906250e-03 : f32
    %8 = vector.broadcast %cst_3 : f32 to vector<8x1xf32>
    %9 = arith.mulf %5, %8 : vector<8x1xf32>
    %10 = arith.mulf %7, %7 : vector<8x1xf32>
    %11 = arith.subf %9, %10 : vector<8x1xf32>
    %cst_4 = arith.constant 0.000000e+00 : f32
    %12 = vector.broadcast %cst_4 : f32 to vector<8x1xf32>
    %13 = arith.maximumf %11, %12 : vector<8x1xf32>
    %cst_5 = arith.constant 9.99999993E-9 : f32
    %14 = vector.broadcast %cst_5 : f32 to vector<8x1xf32>
    %15 = arith.addf %13, %14 : vector<8x1xf32>
    %16 = math.rsqrt %15 : vector<8x1xf32>
    %c0_6 = arith.constant 0 : index
    %c0_7 = arith.constant 0 : index
    %17 = vector.load %arg2[%c0_6, %c0_7] : memref<8x1xf32, #tpu.memory_space<vmem>>, vector<8x1xf32>
    %c0_8 = arith.constant 0 : index
    %c0_9 = arith.constant 0 : index
    %18 = vector.load %arg3[%c0_8, %c0_9] : memref<8x1xf32, #tpu.memory_space<vmem>>, vector<8x1xf32>
    %19 = arith.mulf %16, %17 : vector<8x1xf32>
    %20 = arith.mulf %7, %19 : vector<8x1xf32>
    %21 = arith.subf %18, %20 : vector<8x1xf32>
    %22 = vector.broadcast %19 : vector<8x1xf32> to vector<8x256xf32>
    %23 = arith.mulf %0, %22 : vector<8x256xf32>
    %24 = vector.broadcast %21 : vector<8x1xf32> to vector<8x256xf32>
    %25 = arith.addf %23, %24 : vector<8x256xf32>
    %c0_10 = arith.constant 0 : index
    %c0_11 = arith.constant 0 : index
    %26 = vector.load %arg4[%c0_10, %c0_11] : memref<8x256xf32, #tpu.memory_space<vmem>>, vector<8x256xf32>
    tpu.vector_store %arg4[%c0_10, %c0_11], %25 {strides = array<i32>} : memref<8x256xf32, #tpu.memory_space<vmem>>, vector<8x256xf32>,
    return
  }
  func.func @transform_0(%arg0: i32) -> (i32, i32) {
    %c0_i32 = arith.constant 0 : i32
    %c0_i32_0 = arith.constant 0 : i32
    return %arg0, %c0_i32 : i32, i32
  }
  func.func @transform_1(%arg0: i32) -> (i32, i32) {
    %c0_i32 = arith.constant 0 : i32
    %c0_i32_0 = arith.constant 0 : i32
    return %arg0, %c0_i32 : i32, i32
  }
  func.func @transform_2(%arg0: i32) -> (i32, i32) {
    %c0_i32 = arith.constant 0 : i32
    %c0_i32_0 = arith.constant 0 : i32
    return %arg0, %c0_i32 : i32, i32
  }
  func.func @transform_3(%arg0: i32) -> (i32, i32) {
    %c0_i32 = arith.constant 0 : i32
    %c0_i32_0 = arith.constant 0 : i32
    return %arg0, %c0_i32 : i32, i32
  }
}

</mosaic_0001>

<bundles_post_ra>
// kernel: tpu_custom_call.1
= control target key start
LH: loop header
LB: loop body
LE: loop exit
PB: predicated region body
PF: predicated region fallthrough
CT: control target
= control target key end

     0   :  { %s147_s0 = inlined_call_operand.vmem [shape: f32[8,256], index: 0, kind: input, shape index: {}]   ;;  %s148_s1 = inlined_call_operand.vmem [shape: f32[8,1], index: 1, kind: input, shape index: {}]   ;;  %s149_s2 = inlined_call_operand.vmem [shape: f32[8,1], index: 2, kind: input, shape index: {}]   ;;  %s150_s3 = inlined_call_operand.hbm [shape: f32[8,256], index: 3, kind: output, shape index: {}]  }
   0x1   :  { %v15_v0 = vld [vmem:[%s147_s0] sm:$0xff]  ;;  %v16_v1 = vld [vmem:[%s147_s0 + $0x8] sm:$0xff] }
   0x2   :  { %8 = vsyncpa [#allocation3], 0  ;;  %v17_v2 = vadd.f32 %v16_v1, %v15_v0  ;;  %v20_v3 = vmul.f32 %v15_v0, %v15_v0  ;;  %v21_v4 = vmul.f32 %v16_v1, %v16_v1  ;;  %v110_v6 = vmov 0   ;;  %v41_v21 = vld [vmem:[%s148_s1] sm:$0xff]  ;;  %s111_s19 = smov [#allocation2]   ;;  %s69_s1 = sshll.u32 %s150_s3, 4  ;;  %s70_s1 = int_to_ptr.hbm [resolvable:$true] %s69_s1 }
   0x3   :  { %80 = vset.pattern.permute.xlu1 %v110_v6  ;;  %81 = vset.pattern.permute.xlu0 %v110_v6  ;;  %v42_v25 = vld [vmem:[%s149_s2] sm:$0xff]  ;;  %s67_s20 = sshll.u32 %s111_s19, 4  ;;  %s68_s20 = int_to_ptr.vmem [resolvable:$true] %s67_s20 }
   0x4   :  { %18 = vadd.xlane.f32.xlu0 %v17_v2  ;;  %v22_v5 = vadd.f32 %v21_v4, %v20_v3 }
   0xc   :  { %23 = vadd.xlane.f32.xlu0 %v22_v5 }
  0x77   :  { %v19_v7 = vpop.xlane.xlu0 %18 }
  0x78   :  { %v25_v8 = vmul.f32 0.00390625, %v19_v7 }
  0x7a   :  { %v27_v10 = vmul.f32 %v25_v8, %v25_v8 }
  0x7f   :  { %v24_v9 = vpop.xlane.xlu0 %23 }
  0x80   :  { %v26_v11 = vmul.f32 0.00390625, %v24_v9 }
  0x82   :  { %v28_v12 = vsub.f32 %v26_v11, %v27_v10 }
  0x84   :  { %v29_v13 = vmax.f32 %v28_v12, 0.0 }
  0x86   :  { %v30_v14 = vadd.f32 1e-08, %v29_v13 }
  0x88   :  { %82 = vrsqrt.f32 %v30_v14  ;;  %vm37_vm1 = vweird.f32 %v30_v14 }
  0x8e   :  { %v83_v15 = vpop.eup %82 }
  0x8f   :  { %v32_v16 = vmul.f32 %v83_v15, %v30_v14  ;;  %vm38_vm0 = vweird.f32 %v83_v15 }
  0x90   :  { %vm39_vm2 = vmor %vm37_vm1, %vm38_vm0 }
  0x91   :  { %v33_v17 = vmul.f32 %v83_v15, %v32_v16 }
  0x93   :  { %v34_v18 = vmul.f32 0.5, %v33_v17 }
  0x95   :  { %v35_v19 = vsub.f32 1.5, %v34_v18 }
  0x97   :  { %v36_v20 = vmul.f32 %v83_v15, %v35_v19 }
  0x99   :  { %v40_v22 = vsel %vm39_vm2, %v83_v15, %v36_v20 }
  0x9a   :  { %v43_v23 = vmul.f32 %v41_v21, %v40_v22 }
  0x9c   :  { %48 = vperm.xlu1 %80, %v43_v23   ;;  %v44_v24 = vmul.f32 %v43_v23, %v25_v8 }
  0x9e   :  { %v45_v26 = vsub.f32 %v42_v25, %v44_v24 }
  0xa4   :  { %55 = vperm.xlu1 %80, %v45_v26  }
 0x10e   :  { %v49_v27 = vpop.permute.xlu1 %48 }
 0x10f   :  { %v51_v28 = vmul.f32 %v49_v27, %v15_v0  ;;  %v52_v29 = vmul.f32 %v49_v27, %v16_v1 }
 0x116   :  { %v56_v30 = vpop.permute.xlu1 %55 }
 0x117   :  { %v58_v31 = vadd.f32 %v56_v30, %v51_v28  ;;  %v59_v32 = vadd.f32 %v56_v30, %v52_v29 }
 0x119   :  { %60 = vst [vmem:[#allocation2] sm:$0xff] %v58_v31 }
 0x11a   :  { %61 = vst [vmem:[#allocation2 + $0x8] sm:$0xff] %v59_v32 }
 0x11b   :  { %72 = dma.vmem_to_hbm [thread:$0]  %s68_s20, 256, %s70_s1, [#allocation3]  }
 0x11c   :  { %108 = dma.done.wait [#allocation3], 256  }
 0x11d   :  { %109 = vsyncadd [#allocation3], 4294967040 }
 0x11e   :  { %77 = vsyncpa [#allocation3], 1 }

</bundles_post_ra>
